<compile_context>
chip_gen: v7x
topology: tpu7x:2x2x1
jax: 0.10.0
libtpu: 0.0.40
codegen_flags: <defaults>
</compile_context>

<pallas_src>
import jax
import jax.numpy as jnp
from jax import lax
from jax.experimental import pallas as pl
from jax.experimental.pallas import tpu as pltpu

EPS = 1e-5
NEG_SLOPE = 0.2


def _transpose_conv_block_kernel(x_ref, w_ref, o_ref):
    # x_ref : (1, Cin, H*W)    one sample, channels on sublanes, pixels on lanes
    # w_ref : (4*Cout, Cin)    rows ordered (ky, kx, co), k = 2*ky + kx
    # o_ref : (1, 4*Cout, H*W) row k*Cout+co, lane h*W+w  (lane-dense)
    _, kc, hw = o_ref.shape
    cout = kc // 4

    x = x_ref[0].astype(jnp.float32)          # (Cin, H*W)
    w = w_ref[...].astype(jnp.float32)        # (4*Cout, Cin)

    # ---- ConvTranspose2d(k=2, s=2): single MXU matmul, H*W on lanes ----
    acc = jnp.dot(w, x, preferred_element_type=jnp.float32)   # (4*Cout, H*W)

    # ---- InstanceNorm2d: per-channel stats over all 2H*2W output pixels ----
    # Single-pass sum / sum-of-squares (lane reduces), then combine the
    # four (ky, kx) taps per channel.
    s = jnp.sum(acc, axis=1, keepdims=True)          # (4*Cout, 1)
    ss = jnp.sum(acc * acc, axis=1, keepdims=True)   # (4*Cout, 1)
    s_c = (s[0:cout] + s[cout:2 * cout]
           + s[2 * cout:3 * cout] + s[3 * cout:4 * cout])       # (Cout, 1)
    ss_c = (ss[0:cout] + ss[cout:2 * cout]
            + ss[2 * cout:3 * cout] + ss[3 * cout:4 * cout])    # (Cout, 1)

    inv_count = 1.0 / (4.0 * hw)
    mean = s_c * inv_count
    var = ss_c * inv_count - mean * mean             # E[x^2] - E[x]^2 (biased)
    inv_std = lax.rsqrt(var + EPS)                   # EUP rsqrt

    # Broadcast per-channel stats back to the (4*Cout, 1) row layout.
    mean_f = jnp.concatenate([mean, mean, mean, mean], axis=0)      # (4*Cout, 1)
    inv_f = jnp.concatenate([inv_std, inv_std, inv_std, inv_std], axis=0)

    y = (acc - mean_f) * inv_f
    # ---- LeakyReLU(0.2) ----
    y = jnp.where(y >= 0, y, NEG_SLOPE * y)

    o_ref[0] = y.astype(o_ref.dtype)                 # lane-dense store


def transpose_conv_block(x_nchw, w_iokk):
    """TransposeConvBlock forward.

    x_nchw: (N, Cin, H, W)        input, PyTorch NCHW layout
    w_iokk: (Cin, Cout, 2, 2)     PyTorch ConvTranspose2d weight layout
    returns (N, Cout, 2H, 2W)
    """
    N, Cin, H, W = x_nchw.shape
    Cout = w_iokk.shape[1]
    HW = H * W

    # NCHW spatial flatten is layout-free (no HBM transpose, no pad).
    x_flat = x_nchw.reshape(N, Cin, HW)
    # Weight rows ordered (ky, kx, co): row = (2*ky + kx) * Cout + co.
    w_stack = jnp.transpose(w_iokk, (2, 3, 1, 0)).reshape(4 * Cout, Cin)

    out_flat = pl.pallas_call(
        _transpose_conv_block_kernel,
        out_shape=jax.ShapeDtypeStruct((N, 4 * Cout, HW), jnp.float32),
        grid_spec=pltpu.PrefetchScalarGridSpec(
            num_scalar_prefetch=0,
            grid=(N,),
            in_specs=[
                pl.BlockSpec((1, Cin, HW), lambda n: (n, 0, 0)),
                pl.BlockSpec((4 * Cout, Cin), lambda n: (0, 0)),
            ],
            out_specs=pl.BlockSpec((1, 4 * Cout, HW), lambda n: (n, 0, 0)),
        ),
        compiler_params=pltpu.CompilerParams(
            dimension_semantics=("parallel",),
            vmem_limit_bytes=32 * 1024 * 1024,
        ),
    )(x_flat, w_stack)

    # Reassemble: (n, ky, kx, co, h, w) -> (n, co, h, ky, w, kx) -> NCHW.
    # One wrapper transpose does both the 2x2 pixel-shuffle and NCHW layout.
    out = out_flat.reshape(N, 2, 2, Cout, H, W)
    out = jnp.transpose(out, (0, 3, 4, 1, 5, 2))     # (N, Cout, H, 2, W, 2)
    return out.reshape(N, Cout, 2 * H, 2 * W)

    # TODO(synk): for very large images, tile H*W across a second ("parallel")
    # grid axis with a two-pass instance-norm to bound per-step VMEM on v7x.


def transpose_conv_block_reference(x_nchw, w_iokk):
    """Pure-JAX reference (lhs-dilated conv == transposed conv) for checking."""
    # flip spatial taps and swap I/O channels -> ordinary conv weights (OIHW)
    w_conv = jnp.transpose(jnp.flip(w_iokk, axis=(2, 3)), (1, 0, 2, 3))
    y = lax.conv_general_dilated(
        x_nchw, w_conv,
        window_strides=(1, 1),
        padding=((1, 1), (1, 1)),
        lhs_dilation=(2, 2),
        dimension_numbers=("NCHW", "OIHW", "NCHW"),
        precision=lax.Precision.HIGHEST)
    m = jnp.mean(y, axis=(2, 3), keepdims=True)
    v = jnp.mean((y - m) ** 2, axis=(2, 3), keepdims=True)
    z = (y - m) * lax.rsqrt(v + EPS)
    return jnp.where(z >= 0, z, NEG_SLOPE * z)


if __name__ == "__main__":
    # Small shapes consistent with the module: (N, in_chans, H, W).
    N, Cin, Cout, H, W = 2, 4, 8, 16, 16

    key = jax.random.PRNGKey(0)
    kx, kw = jax.random.split(key)
    x = jax.random.normal(kx, (N, Cin, H, W), jnp.float32)
    # PyTorch ConvTranspose2d weight layout: (in_chans, out_chans, kH, kW).
    w = jax.random.normal(kw, (Cin, Cout, 2, 2), jnp.float32) * 0.1

    out = transpose_conv_block(x, w)
    out = jax.block_until_ready(out)

    ref = transpose_conv_block_reference(x, w)
    assert out.shape == (N, Cout, 2 * H, 2 * W), out.shape
    max_err = float(jnp.max(jnp.abs(out - ref)))
    assert jnp.allclose(out, ref, atol=1e-4, rtol=1e-4), max_err

    print("KERNEL_OK")
</pallas_src>

<mosaic_0001>
module attributes {stable_mosaic.version = 11 : i64} {
  func.func @_transpose_conv_block_kernel(%arg0: i32, %arg1: memref<1x4x256xf32, #tpu.memory_space<vmem>>, %arg2: memref<32x4xf32, #tpu.memory_space<vmem>>, %arg3: memref<1x32x256xf32, #tpu.memory_space<vmem>>) attributes {dimension_semantics = [#tpu.dimension_semantics<parallel>], iteration_bounds = array<i64: 2>, scalar_prefetch = 0 : i64, scratch_operands = 0 : i64, tpu.core_type = #tpu.core_type<tc>, window_params = [{transform_indices = @transform_0, window_bounds = array<i64: 1, 4, 256>}, {pipeline_mode = #tpu.pipeline_mode<synchronous>, transform_indices = @transform_1, window_bounds = array<i64: 32, 4>}, {transform_indices = @transform_2, window_bounds = array<i64: 1, 32, 256>}]} {
    %c0 = arith.constant 0 : index
    %c0_0 = arith.constant 0 : index
    %c0_1 = arith.constant 0 : index
    %0 = vector.load %arg1[%c0, %c0_0, %c0_1] : memref<1x4x256xf32, #tpu.memory_space<vmem>>, vector<1x4x256xf32>
    %1 = vector.shape_cast %0 : vector<1x4x256xf32> to vector<4x256xf32>
    %c0_2 = arith.constant 0 : index
    %c0_3 = arith.constant 0 : index
    %2 = vector.load %arg2[%c0_2, %c0_3] : memref<32x4xf32, #tpu.memory_space<vmem>>, vector<32x4xf32>
    %cst = arith.constant dense<0.000000e+00> : vector<32x256xf32>
    %3 = tpu.matmul %2, %1, %cst {dimension_numbers = #tpu.dot_dimension_numbers<[1], [0], [0], [1], [0, 0, 1, 1], [], []>} : vector<32x4xf32>, vector<4x256xf32>, vector<32x256xf32> -> vector<32x256xf32>
    %cst_4 = arith.constant dense<0.000000e+00> : vector<32xf32>
    %4 = vector.multi_reduction <add>, %3, %cst_4 [1] : vector<32x256xf32> to vector<32xf32>
    %5 = vector.shape_cast %4 : vector<32xf32> to vector<32x1xf32>
    %6 = arith.mulf %3, %3 : vector<32x256xf32>
    %cst_5 = arith.constant dense<0.000000e+00> : vector<32xf32>
    %7 = vector.multi_reduction <add>, %6, %cst_5 [1] : vector<32x256xf32> to vector<32xf32>
    %8 = vector.shape_cast %7 : vector<32xf32> to vector<32x1xf32>
    %9 = vector.extract_strided_slice %5 {offsets = [0, 0], sizes = [8, 1], strides = [1, 1]} : vector<32x1xf32> to vector<8x1xf32>
    %10 = vector.extract_strided_slice %5 {offsets = [8, 0], sizes = [8, 1], strides = [1, 1]} : vector<32x1xf32> to vector<8x1xf32>
    %11 = arith.addf %9, %10 : vector<8x1xf32>
    %12 = vector.extract_strided_slice %5 {offsets = [16, 0], sizes = [8, 1], strides = [1, 1]} : vector<32x1xf32> to vector<8x1xf32>
    %13 = arith.addf %11, %12 : vector<8x1xf32>
    %14 = vector.extract_strided_slice %5 {offsets = [24, 0], sizes = [8, 1], strides = [1, 1]} : vector<32x1xf32> to vector<8x1xf32>
    %15 = arith.addf %13, %14 : vector<8x1xf32>
    %16 = vector.extract_strided_slice %8 {offsets = [0, 0], sizes = [8, 1], strides = [1, 1]} : vector<32x1xf32> to vector<8x1xf32>
    %17 = vector.extract_strided_slice %8 {offsets = [8, 0], sizes = [8, 1], strides = [1, 1]} : vector<32x1xf32> to vector<8x1xf32>
    %18 = arith.addf %16, %17 : vector<8x1xf32>
    %19 = vector.extract_strided_slice %8 {offsets = [16, 0], sizes = [8, 1], strides = [1, 1]} : vector<32x1xf32> to vector<8x1xf32>
    %20 = arith.addf %18, %19 : vector<8x1xf32>
    %21 = vector.extract_strided_slice %8 {offsets = [24, 0], sizes = [8, 1], strides = [1, 1]} : vector<32x1xf32> to vector<8x1xf32>
    %22 = arith.addf %20, %21 : vector<8x1xf32>
    %cst_6 = arith.constant 9.765625E-4 : f32
    %23 = vector.broadcast %cst_6 : f32 to vector<8x1xf32>
    %24 = arith.mulf %15, %23 : vector<8x1xf32>
    %cst_7 = arith.constant 9.765625E-4 : f32
    %25 = vector.broadcast %cst_7 : f32 to vector<8x1xf32>
    %26 = arith.mulf %22, %25 : vector<8x1xf32>
    %27 = arith.mulf %24, %24 : vector<8x1xf32>
    %28 = arith.subf %26, %27 : vector<8x1xf32>
    %cst_8 = arith.constant 9.99999974E-6 : f32
    %29 = vector.broadcast %cst_8 : f32 to vector<8x1xf32>
    %30 = arith.addf %28, %29 : vector<8x1xf32>
    %31 = math.rsqrt %30 : vector<8x1xf32>
    %32 = tpu.concatenate %24, %24, %24, %24 in 0 : vector<8x1xf32>, vector<8x1xf32>, vector<8x1xf32>, vector<8x1xf32> -> vector<32x1xf32>
    %33 = tpu.concatenate %31, %31, %31, %31 in 0 : vector<8x1xf32>, vector<8x1xf32>, vector<8x1xf32>, vector<8x1xf32> -> vector<32x1xf32>
    %34 = vector.broadcast %32 : vector<32x1xf32> to vector<32x256xf32>
    %35 = arith.subf %3, %34 : vector<32x256xf32>
    %36 = vector.broadcast %33 : vector<32x1xf32> to vector<32x256xf32>
    %37 = arith.mulf %35, %36 : vector<32x256xf32>
    %cst_9 = arith.constant 0.000000e+00 : f32
    %38 = vector.broadcast %cst_9 : f32 to vector<32x256xf32>
    %39 = arith.cmpf oge, %37, %38 : vector<32x256xf32>
    %cst_10 = arith.constant 2.000000e-01 : f32
    %40 = vector.broadcast %cst_10 : f32 to vector<32x256xf32>
    %41 = arith.mulf %40, %37 : vector<32x256xf32>
    %42 = arith.select %39, %37, %41 : vector<32x256xi1>, vector<32x256xf32>
    %c0_11 = arith.constant 0 : index
    %c0_12 = arith.constant 0 : index
    %c0_13 = arith.constant 0 : index
    %43 = vector.load %arg3[%c0_11, %c0_12, %c0_13] : memref<1x32x256xf32, #tpu.memory_space<vmem>>, vector<1x32x256xf32>
    %44 = vector.shape_cast %43 : vector<1x32x256xf32> to vector<32x256xf32>
    %45 = vector.shape_cast %42 : vector<32x256xf32> to vector<1x32x256xf32>
    tpu.vector_store %arg3[%c0_11, %c0_12, %c0_13], %45 {strides = array<i32>} : memref<1x32x256xf32, #tpu.memory_space<vmem>>, vector<1x32x256xf32>,
    return
  }
  func.func @transform_0(%arg0: i32) -> (i32, i32, i32) {
    %c0_i32 = arith.constant 0 : i32
    %c0_i32_0 = arith.constant 0 : i32
    %c0_i32_1 = arith.constant 0 : i32
    return %arg0, %c0_i32, %c0_i32_0 : i32, i32, i32
  }
  func.func @transform_1(%arg0: i32) -> (i32, i32) {
    %c0_i32 = arith.constant 0 : i32
    %c0_i32_0 = arith.constant 0 : i32
    %c0_i32_1 = arith.constant 0 : i32
    return %c0_i32, %c0_i32_0 : i32, i32
  }
  func.func @transform_2(%arg0: i32) -> (i32, i32, i32) {
    %c0_i32 = arith.constant 0 : i32
    %c0_i32_0 = arith.constant 0 : i32
    %c0_i32_1 = arith.constant 0 : i32
    return %arg0, %c0_i32, %c0_i32_0 : i32, i32, i32
  }
}

</mosaic_0001>

<bundles_post_ra>
// kernel: tpu_custom_call.1
= control target key start
LH: loop header
LB: loop body
LE: loop exit
PB: predicated region body
PF: predicated region fallthrough
CT: control target
= control target key end

     0   :  { %7 = vsyncpa [#allocation3], 0  ;;  %s745_s0 = inlined_call_operand.vmem [shape: f32[2,4,256], index: 0, kind: input, shape index: {}]   ;;  %s746_s1 = inlined_call_operand.vmem [shape: f32[32,4], index: 1, kind: input, shape index: {}]   ;;  %s747_s2 = inlined_call_operand.hbm [shape: f32[2,32,256], index: 2, kind: output, shape index: {}]  }
   0x1   :  { %9 = vsyncpa [#allocation3 + $0x1], 0  ;;  %s588_s9 = smov 0   ;;  %s590_s10 = smov 0  }
   0x2   :  { %s592_s11 = smov 0   ;;  %s594_s12 = smov 0  }
   0x3 LB: > { %s609_s13 = sadd.s32 4294967295, %s566_s12   ;;  %s434_s14 = sadd.s32 4294967294, %s566_s12   ;;  %s566_s12 = sphi %s594_s12, %s753_s12   ;;  %s562_s11 = sphi %s592_s11, %s752_s11   ;;  %s558_s10 = sphi %s590_s10, %s751_s10   ;;  %s554_s9 = sphi %s588_s9, %s750_s9  }
   0x4   : > { %s613_s15 = sadd.s32 1, %s566_s12   ;;  %s69_s16 = sadd.s32 1, %s562_s11 }
   0x5   : > { %s66_s17 = ssub.s32 %s566_s12, %s613_s15  ;;  %p79_p0 = scmp.ne.s32.totalorder %s562_s11, %s558_s10 }
   0x6   : > { %p67_p1 = scmp.eq.s32.totalorder %s66_s17, 0  ;;  %p80_p2 = scmp.eq.s32.totalorder %s609_s13, 1 }
   0x7   : > { %p85_p3 = scmp.ne.s32.totalorder %s558_s10, %s554_s9  ;;  %p86_p4 = scmp.eq.s32.totalorder %s434_s14, 1 }
   0x8   : > { %s624_s18 = scalar_select %p67_p1, %s562_s11, %s69_s16  }
   0x9   : > { %p626_p5 = por %p80_p2, %p79_p0  ;;  %p630_p6 = por %p86_p4, %p85_p3 }
   0xa   : > { %p437_p7 = scmp.ge.s32.totalorder %s566_s12, 1  ;;  %p115_p8 = scmp.lt.s32.totalorder %s566_s12, 3 }
   0xc   : > { %p116_p9 = pnand %p437_p7, %p115_p8 }
   0xd   : > { %p137_p10 = scmp.lt.s32.totalorder (!%p116_p9), %s609_s13, 1  ;;  %v568_v0 = vmov (!%p116_p9), 0.0   ;;  %vm162_vm0 = vcmask (!%p116_p9), 1043456   ;;  %v143_v3 = vld [vmem:[%s746_s1] sm:$0xff] (!%p116_p9)  ;;  %vm149_vm1 = vcmask (!%p116_p9), 31744   ;;  %v145_v4 = vld [vmem:[%s746_s1 + $0x10] sm:$0xff] (!%p116_p9) }
   0xe   : > { %119 = sbr.rel (%p116_p9) target bundleno = 574 (0x23e), region = 28  ;;  %231 = vmatprep.mubr.f32.mxu0 (!%p116_p9), %v568_v0  ;;  %243 = vmatprep.mubr.f32.mxu1 (!%p116_p9), %v568_v0  ;;  %v144_v5 = vld [vmem:[%s746_s1 + $0x8] sm:$0xff] (!%p116_p9)  ;;  %v146_v6 = vld [vmem:[%s746_s1 + $0x18] sm:$0xff] (!%p116_p9)  ;;  %v569_v31 = vmov (!%p116_p9), 0   ;;  %s134_s6 = sand.u32 (!%p116_p9), 1, %s558_s10  }
   0xf   : > { %499 = vset.pattern.permute.xlu0 (!%p116_p9), %v569_v31  ;;  %500 = vset.pattern.permute.xlu1 (!%p116_p9), %v569_v31  ;;  %s438_s7 = sshll.u32 (!%p116_p9), %s134_s6, 6  ;;  %s453_s8 = sshll.u32 (!%p116_p9), %s609_s13, 10 }
  0x10   : > { %s136_s14 = scalar_lea.vmem (!%p116_p9), [#allocation2], %s438_s7  ;;  %s570_s24 = smov (!%p116_p9), [#allocation2]  }
  0x11   : > { %s372_s16 = sshll.u32 (!%p116_p9), %s136_s14, 4  ;;  %s694_s16 = int_to_ptr.vmem [resolvable:$true] %s372_s16 }
  0x12   : > { %s504_s23 = scalar_lea.vmem (!%p116_p9), %s694_s16, 1024 }
  0x13   : > { %p505_p11 = scmp.ne.s32.totalorder (!%p116_p9), %s694_s16, %s504_s23 }
  0x15   : > { %s138_s21 = scalar_select %p137_p10, %s609_s13, 1 }
  0x16   : > { %p506_p12 = pnand %p505_p11, %p626_p5 }
  0x17   : > { %s452_s22 = sshll.u32 %s138_s21, 3  ;;  %s692_s21 = scalar_lea.hbm %s747_s2, %s453_s8 }
  0x18   : > { %s141_s25 = scalar_lea.vmem %s745_s0, %s452_s22  ;;  %s704_s22 = scalar_lea.sflag [#allocation3], %s134_s6 }
  0x19   : > { %v142_v1 = vld [vmem:[%s141_s25] sm:$0xff]  ;;  %p507_p13 = pneg %p506_p12  ;;  %s508_s25 = sshll.u32 %s570_s24, 4  ;;  %s509_s25 = int_to_ptr.vmem [resolvable:$false] %s508_s25 }
  0x1a   : > { %v148_v2 = vcombine.high %v142_v1, %v142_v1  ;;  %s510_s26 = scalar_lea.vmem %s509_s25, 2048  ;;  %p511_p0 = scmp.lt.s32.totalorder %s694_s16, %s509_s25 }
  0x1b   : > { %p512_p1 = scmp.lt.s32.totalorder %s510_s26, %s504_s23 }
  0x1c   : > { %441 = vmatprep.subr.msk.mxu0 %vm162_vm0, %v148_v2  ;;  %454 = vmatprep.subr.msk.mxu1 %vm162_vm0, %v148_v2 }
  0x1d   : > { %442 = vmatpush1.msk.msra.mxu0 %vm162_vm0, %v142_v1  ;;  %455 = vmatpush1.msk.msra.mxu1 %vm162_vm0, %v142_v1  ;;  %p513_p2 = por %p512_p1, %p511_p0 }
  0x1e   : > { %443 = vmatmul.mubr.msk.f32.vlgmr.msra.gmra.mrb[0].mxu0 %vm149_vm1, %v143_v3  ;;  %445 = vmatmul.mubr.msk.f32.vlgmr.msra.gmra.mrb[0].mxu1 %vm149_vm1, %v145_v4 }
  0x1f   : > { %237 = vmatprep.mubr.f32.mxu0 %v568_v0  ;;  %249 = vmatprep.mubr.f32.mxu1 %v568_v0  ;;  %p514_p3 = pnand %p513_p2, %p507_p13 }
  0x22   : > { %444 = vmatmul.mubr.msk.f32.gmra.mrb[2].mxu0 %vm149_vm1, %v144_v5  ;;  %446 = vmatmul.mubr.msk.f32.gmra.mrb[2].mxu1 %vm149_vm1, %v146_v6 }
  0xf1   : > { %v653_v7 = vpop.f32.mrb[0].mxu0  ;;  %v655_v8 = vpop.f32.mrb[0].mxu1 }
  0xf2   : > { %v657_v9 = vpop.f32.mrb[1].mxu0  ;;  %v659_v10 = vpop.f32.mrb[1].mxu1  ;;  %v268_v11 = vmul.f32 %v653_v7, %v653_v7  ;;  %v272_v12 = vmul.f32 %v655_v8, %v655_v8 }
  0xf3   : > { %v262_v13 = vadd.f32 %v659_v10, %v655_v8  ;;  %v256_v14 = vadd.f32 %v657_v9, %v653_v7  ;;  %v269_v15 = vmul.f32 %v657_v9, %v657_v9  ;;  %v273_v16 = vmul.f32 %v659_v10, %v659_v10 }
  0xf5   : > { %263 = vadd.xlane.f32.xlu1 %v262_v13  ;;  %257 = vadd.xlane.f32.xlu0 %v256_v14  ;;  %v239_v17 = vpop.f32.mrb[2].mxu0  ;;  %v673_v18 = vpop.f32.mrb[2].mxu1  ;;  %v276_v19 = vadd.f32 %v269_v15, %v268_v11  ;;  %v282_v20 = vadd.f32 %v273_v16, %v272_v12 }
  0xf6   : > { %v241_v21 = vpop.f32.mrb[3].mxu0  ;;  %v253_v22 = vpop.f32.mrb[3].mxu1  ;;  %v270_v23 = vmul.f32 %v239_v17, %v239_v17  ;;  %v274_v24 = vmul.f32 %v673_v18, %v673_v18 }
  0xf7   : > { %v271_v25 = vmul.f32 %v241_v21, %v241_v21  ;;  %v259_v26 = vadd.f32 %v241_v21, %v239_v17  ;;  %v275_v27 = vmul.f32 %v253_v22, %v253_v22  ;;  %v265_v28 = vadd.f32 %v253_v22, %v673_v18 }
  0xf9   : > { %277 = vadd.xlane.f32.xlu1 %v276_v19  ;;  %260 = vadd.xlane.f32.xlu0 %v259_v26  ;;  %v279_v29 = vadd.f32 %v271_v25, %v270_v23  ;;  %v285_v30 = vadd.f32 %v275_v27, %v274_v24 }
  0xfd   : > { %266 = vadd.xlane.f32.xlu1 %v265_v28  ;;  %280 = vadd.xlane.f32.xlu0 %v279_v29 }
 0x101   : > { %286 = vadd.xlane.f32.xlu1 %v285_v30  ;;  %283 = vadd.xlane.f32.xlu0 %v282_v20 }
 0x182   : > { %v264_v32 = vpop.xlane.xlu1 %263  ;;  %v258_v33 = vpop.xlane.xlu0 %257 }
 0x186   : > { %v278_v34 = vpop.xlane.xlu1 %277  ;;  %v261_v35 = vpop.xlane.xlu0 %260 }
 0x187   : > { %v288_v36 = vadd.f32 %v261_v35, %v258_v33 }
 0x189   : > { %v289_v37 = vadd.f32 %v288_v36, %v264_v32 }
 0x18a   : > { %v267_v38 = vpop.xlane.xlu1 %266  ;;  %v281_v39 = vpop.xlane.xlu0 %280 }
 0x18b   : > { %v290_v40 = vadd.f32 %v289_v37, %v267_v38  ;;  %v291_v42 = vadd.f32 %v281_v39, %v278_v34 }
 0x18d   : > { %v294_v41 = vmul.f32 0.0009765625, %v290_v40 }
 0x18e   : > { %v284_v43 = vpop.xlane.xlu0 %283  ;;  %v287_v45 = vpop.xlane.xlu1 %286 }
 0x18f   : > { %v292_v44 = vadd.f32 %v291_v42, %v284_v43  ;;  %302 = vperm.xlu0 %499, %v294_v41   ;;  %v296_v47 = vmul.f32 %v294_v41, %v294_v41 }
 0x191   : > { %v293_v46 = vadd.f32 %v292_v44, %v287_v45 }
 0x193   : > { %v295_v48 = vmul.f32 0.0009765625, %v293_v46 }
 0x195   : > { %v297_v49 = vsub.f32 %v295_v48, %v296_v47 }
 0x197   : > { %v298_v50 = vadd.f32 1e-05, %v297_v49 }
 0x199   : > { %502 = vrsqrt.f32 %v298_v50 }
 0x1a3   : > { %v503_v51 = vpop.eup %502 }
 0x1a4   : > { %315 = vperm.xlu1 %500, %v503_v51  }
 0x20e   : > { %v303_v52 = vpop.permute.xlu0 %302 }
 0x20f   : > { %v305_v53 = vsub.f32 %v653_v7, %v303_v52  ;;  %v306_v54 = vsub.f32 %v657_v9, %v303_v52  ;;  %v307_v55 = vsub.f32 %v239_v17, %v303_v52  ;;  %v308_v56 = vsub.f32 %v241_v21, %v303_v52 }
 0x210   : > { %v309_v57 = vsub.f32 %v655_v8, %v303_v52  ;;  %v310_v58 = vsub.f32 %v659_v10, %v303_v52  ;;  %v311_v59 = vsub.f32 %v673_v18, %v303_v52  ;;  %v312_v60 = vsub.f32 %v253_v22, %v303_v52 }
 0x223   : > { %v316_v61 = vpop.permute.xlu1 %315 }
 0x224   : > { %v318_v62 = vmul.f32 %v316_v61, %v305_v53  ;;  %v319_v63 = vmul.f32 %v316_v61, %v306_v54  ;;  %v320_v0 = vmul.f32 %v316_v61, %v307_v55  ;;  %v321_v1 = vmul.f32 %v316_v61, %v308_v56 }
 0x225   : > { %v322_v2 = vmul.f32 %v316_v61, %v309_v57  ;;  %v323_v3 = vmul.f32 %v316_v61, %v310_v58  ;;  %v324_v4 = vmul.f32 %v316_v61, %v311_v59  ;;  %v325_v5 = vmul.f32 %v316_v61, %v312_v60 }
 0x226   : > { %vm326_vm2 = vcmp.ge.f32.partialorder %v318_v62, 0.0  ;;  %vm327_vm3 = vcmp.ge.f32.partialorder %v319_v63, 0.0  ;;  %vm328_vm4 = vcmp.ge.f32.partialorder %v320_v0, 0.0  ;;  %vm329_vm5 = vcmp.ge.f32.partialorder %v321_v1, 0.0 }
 0x227   : > { %vm330_vm6 = vcmp.ge.f32.partialorder %v322_v2, 0.0  ;;  %vm331_vm7 = vcmp.ge.f32.partialorder %v323_v3, 0.0  ;;  %vm332_vm8 = vcmp.ge.f32.partialorder %v324_v4, 0.0  ;;  %vm333_vm9 = vcmp.ge.f32.partialorder %v325_v5, 0.0 }
 0x228   : > { %v334_v6 = vmul.f32 0.2, %v318_v62  ;;  %v335_v7 = vmul.f32 0.2, %v319_v63  ;;  %v336_v8 = vmul.f32 0.2, %v320_v0 }
 0x229   : > { %v337_v9 = vmul.f32 0.2, %v321_v1  ;;  %v338_v10 = vmul.f32 0.2, %v322_v2  ;;  %v339_v11 = vmul.f32 0.2, %v323_v3 }
 0x22a   : > { %v340_v12 = vmul.f32 0.2, %v324_v4  ;;  %v341_v13 = vmul.f32 0.2, %v325_v5  ;;  %v342_v14 = vsel %vm326_vm2, %v318_v62, %v334_v6  ;;  %v343_v15 = vsel %vm327_vm3, %v319_v63, %v335_v7 }
 0x22b   : > { %v344_v16 = vsel %vm328_vm4, %v320_v0, %v336_v8  ;;  %v345_v17 = vsel %vm329_vm5, %v321_v1, %v337_v9  ;;  %v346_v18 = vsel %vm330_vm6, %v322_v2, %v338_v10  ;;  %v347_v19 = vsel %vm331_vm7, %v323_v3, %v339_v11  ;;  %350 = vst [vmem:[%s136_s14] sm:$0xff] %v342_v14 }
 0x22c   : > { %351 = vst [vmem:[%s136_s14 + $0x8] sm:$0xff] %v343_v15  ;;  %v348_v20 = vsel %vm332_vm8, %v324_v4, %v340_v12  ;;  %v349_v21 = vsel %vm333_vm9, %v325_v5, %v341_v13  ;;  %352 = vst [vmem:[%s136_s14 + $0x10] sm:$0xff] %v344_v16 }
 0x22d   : > { %353 = vst [vmem:[%s136_s14 + $0x18] sm:$0xff] %v345_v17  ;;  %354 = vst [vmem:[%s136_s14 + $0x20] sm:$0xff] %v346_v18 }
 0x22e   : > { %355 = vst [vmem:[%s136_s14 + $0x28] sm:$0xff] %v347_v19  ;;  %356 = vst [vmem:[%s136_s14 + $0x30] sm:$0xff] %v348_v20 }
 0x22f   : > { %357 = vst [vmem:[%s136_s14 + $0x38] sm:$0xff] %v349_v21 }
 0x230   : > { %517 = shalt.err (!%p514_p3)
}
 0x231   : > { %s518_s27 = scalar_lea.hbm %s692_s21, 1024  ;;  %s522_s30 = scalar_lea.hbm %s747_s2, 2048 }
 0x232   : > { %p519_p4 = scmp.ne.s32.totalorder %s692_s21, %s518_s27  ;;  %p523_p9 = scmp.lt.u32.totalorder %s692_s21, %s747_s2 }
 0x233   : > { %p524_p10 = scmp.lt.u32.totalorder %s522_s30, %s518_s27  ;;  %p526_p12 = scmp.lt.u32.totalorder %s518_s27, %s692_s21 }
 0x234   : > { %p520_p7 = pnand %p519_p4, %p626_p5 }
 0x235   : > { %p525_p11 = por %p524_p10, %p523_p9 }
 0x236   : > { %p521_p8 = pneg %p520_p7 }
 0x237   : > { %p527_p13 = por %p526_p12, %p525_p11 }
 0x239   : > { %p528_p0 = pnand %p527_p13, %p521_p8 }
 0x23b   : > { %531 = shalt.err (!%p528_p0)
}
 0x23c   : > { %s571_s5 = smov 256   ;;  %s572_s6 = smov 16  }
 0x23d   : > { %456 = dma.vmem_to_hbm [thread:$0]  (%p626_p5), %s694_s16, 1024, %s692_s21, %s704_s22, %s571_s5, %s571_s5, %s572_s6  }
 0x23e PF: > { %p462_p1 = scmp.ge.s32.totalorder %s566_s12, 2  ;;  %s387_s7 = sand.u32 1, %s554_s9  }
 0x23f   : > { %s388_s8 = scalar_lea.sflag [#allocation3], %s387_s7 }
 0x240   : > { %p459_p2 = pnand %p462_p1, %p630_p6 }
 0x242   : > { %549 = dma.done.wait (!%p459_p2), %s388_s8, 1024  }
 0x243   : > { %551 = vsyncadd (!%p459_p2), %s388_s8, 4294966272  ;;  %p12_p3 = scmp.ge.s32.totalorder %s613_s15, 4   ;;  %s750_s9 = smov %s558_s10 }
 0x244   : > { %s751_s10 = smov %s562_s11  ;;  %s752_s11 = smov %s624_s18 }
 0x245   : > { %s753_s12 = smov %s613_s15  ;;  %14 = sbr.rel (!%p12_p3) target bundleno = 3 (0x3), region = 63 }
 0x24c   :  { %393 = vsyncpa [#allocation3], 1 }
 0x24d   :  { %395 = vsyncpa [#allocation3 + $0x1], 1 }

</bundles_post_ra>
